<compile_context>
chip_gen: v7x
topology: tpu7x:2x2x1
jax: 0.10.0
libtpu: 0.0.40
codegen_flags: <defaults>
</compile_context>

<pallas_src>
import jax
import jax.numpy as jnp
from jax.experimental import pallas as pl
from jax.experimental.pallas import tpu as pltpu


# ---------------- Pallas kernel: fused N-layer pointwise-conv MLP ----------------
def _make_convmlp_kernel(num_layers, compute_dtype):
    def kernel(*refs):
        # refs = (x_ref, w1_ref, b1_ref, ..., wN_ref, bN_ref, o_ref)
        x_ref, o_ref = refs[0], refs[-1]
        ws = [refs[1 + 2 * i][...] for i in range(num_layers)]  # (C_out, C_in)
        bs = [refs[2 + 2 * i][...] for i in range(num_layers)]  # (C_out, 1) f32
        tb = x_ref.shape[0]
        for t in range(tb):                              # short static unroll over batch rows
            h = x_ref[t].astype(compute_dtype)           # in-kernel cast (f32 HBM -> bf16 MXU)
            for i in range(num_layers):
                h = jnp.dot(ws[i], h, preferred_element_type=jnp.float32)
                h = jnp.maximum(h + bs[i], 0.0)          # bias + ReLU in f32
                if i + 1 < num_layers:
                    h = h.astype(compute_dtype)          # back to MXU input dtype
            o_ref[t] = h.astype(o_ref.dtype)
    return kernel


def convmlp_forward(x_ncl, params, *, tile_l=8192, compute_dtype=jnp.bfloat16,
                    out_dtype=None, fold_batch_below=512,
                    target_step_bytes=512 * 1024):
    """x_ncl: (B, C0, L). params: [(w_i (c_out, c_in), b_i (c_out,)), ...].

    Returns (B, c_out_final, L) in out_dtype (defaults to compute_dtype)."""
    B, C0, L = x_ncl.shape
    num_layers = len(params)
    out_dtype = out_dtype if out_dtype is not None else compute_dtype
    c_out_final = params[-1][0].shape[0]
    assert tile_l % 128 == 0, "tile_l must be a multiple of 128 (lane width)"

    # Small-L regime: fold batch into the lane axis (cheap: only C0 channels in,
    # c_out channels out of layout plumbing) so tiles stay lane-dense.
    fold = L < fold_batch_below
    if fold:
        x_eff = jnp.transpose(x_ncl, (1, 0, 2)).reshape(1, C0, B * L)
        B_eff, L_eff = 1, B * L
    else:
        x_eff = x_ncl
        B_eff, L_eff = B, L

    # Lane tile: full-extent block when L_eff fits (legal regardless of 128
    # alignment), otherwise a 128-multiple tile with a masked ragged last block.
    tl = L_eff if L_eff <= tile_l else tile_l
    grid_l = pl.cdiv(L_eff, tl)

    # Batch-blocking: enough HBM bytes per grid step to amortize ~0.35us/step.
    row_bytes = tl * (C0 * jnp.dtype(x_eff.dtype).itemsize
                      + c_out_final * jnp.dtype(out_dtype).itemsize)
    tb = max(1, min(B_eff, 8, -(-target_step_bytes // row_bytes)))
    # Keep >= 2 total grid steps where possible so both v7x TensorCores get work.
    while tb > 1 and pl.cdiv(B_eff, tb) * grid_l < 2:
        tb -= 1
    grid_b = pl.cdiv(B_eff, tb)

    in_specs = [pl.BlockSpec((tb, C0, tl), lambda b, j: (b, 0, j))]  # x tiled
    flat_wb = []
    for (w, bias) in params:
        co, ci = w.shape
        flat_wb.append(w.astype(compute_dtype))
        flat_wb.append(bias.reshape(co, 1).astype(jnp.float32))
        in_specs.append(pl.BlockSpec((co, ci), lambda b, j: (0, 0)))  # VMEM resident
        in_specs.append(pl.BlockSpec((co, 1), lambda b, j: (0, 0)))   # VMEM resident

    out = pl.pallas_call(
        _make_convmlp_kernel(num_layers, compute_dtype),
        out_shape=jax.ShapeDtypeStruct((B_eff, c_out_final, L_eff), out_dtype),
        grid_spec=pltpu.PrefetchScalarGridSpec(
            num_scalar_prefetch=0,
            grid=(grid_b, grid_l),
            in_specs=in_specs,
            out_specs=pl.BlockSpec((tb, c_out_final, tl), lambda b, j: (b, 0, j)),
        ),
        compiler_params=pltpu.CompilerParams(
            dimension_semantics=("parallel", "parallel"),
            vmem_limit_bytes=32 * 1024 * 1024,
        ),
    )(x_eff, *flat_wb)

    if fold:
        out = jnp.transpose(out.reshape(c_out_final, B, L), (1, 0, 2))
    return out


# ---------------- deterministic parameter init (matches nn.Conv1d ks=1) ----------------
def init_params(key, layer_channels):
    """kaiming_normal_ (fan_in = c_in * ks, gain sqrt(2)) weights, zero bias.
    Conv1d weight (c_out, c_in, 1) stored as (c_out, c_in)."""
    params = []
    for i in range(1, len(layer_channels)):
        c_in, c_out = layer_channels[i - 1], layer_channels[i]
        key, sub = jax.random.split(key)
        std = (2.0 / c_in) ** 0.5
        w = std * jax.random.normal(sub, (c_out, c_in), dtype=jnp.float32)
        b = jnp.zeros((c_out,), dtype=jnp.float32)
        params.append((w, b))
    return params


# ---------------- reference (plain JAX) for correctness checks ----------------
def convmlp_ref(x_ncl, params, compute_dtype=jnp.float32):
    """Mirrors the kernel's dtype flow: MXU inputs in compute_dtype, f32 accum,
    f32 bias+ReLU, inter-layer cast back to compute_dtype (output left in f32)."""
    x = x_ncl.astype(compute_dtype)
    y = x
    for (w, b) in params:
        y = jnp.einsum("oc,bcl->bol", w.astype(compute_dtype), x,
                       preferred_element_type=jnp.float32,
                       precision=jax.lax.Precision.HIGHEST)
        y = jnp.maximum(y + b.astype(jnp.float32)[None, :, None], 0.0)
        x = y.astype(compute_dtype)
    return y


if __name__ == "__main__":
    # ConvMLP(4, 32, 16) with bn=False, act=relu
    layer_channels = (4, 32, 16)
    B, L = 2, 16

    key = jax.random.PRNGKey(0)
    key, xk = jax.random.split(key)
    x = jax.random.normal(xk, (B, layer_channels[0], L), dtype=jnp.float32)
    params = init_params(key, layer_channels)

    # 1) f32 compute path (test-only; v5e production should use bf16): check
    #    against the plain-JAX reference.  Tolerance 1e-4 absorbs any bf16-pass
    #    emulation of the f32 matmul inside Mosaic vs Precision.HIGHEST in XLA.
    out_f32 = jax.block_until_ready(
        convmlp_forward(x, params, compute_dtype=jnp.float32))
    ref_f32 = convmlp_ref(x, params, compute_dtype=jnp.float32)
    assert out_f32.shape == (B, layer_channels[-1], L)
    assert jnp.allclose(out_f32, ref_f32, atol=1e-4, rtol=1e-4), "f32 mismatch"

    # 2) Production path (small-L fold regime): bf16 MXU inputs, f32 accumulate,
    #    bf16 output by default.  Tolerance covers bf16 input + output quantization.
    out_bf16 = jax.block_until_ready(convmlp_forward(x, params))
    ref_bf16 = convmlp_ref(x, params, compute_dtype=jnp.bfloat16)
    assert out_bf16.shape == (B, layer_channels[-1], L)
    assert out_bf16.dtype == jnp.bfloat16
    assert jnp.allclose(out_bf16.astype(jnp.float32), ref_bf16,
                        atol=2e-2, rtol=2e-2), "bf16 mismatch"

    # 3) Batched / ragged path: L not a multiple of the lane tile, TB=2 batch
    #    blocking, masked last block (no wrapper pad / slice).
    L2 = 600
    key, xk2 = jax.random.split(key)
    x2 = jax.random.normal(xk2, (B, layer_channels[0], L2), dtype=jnp.float32)
    out2 = jax.block_until_ready(convmlp_forward(x2, params, tile_l=256))
    ref2 = convmlp_ref(x2, params, compute_dtype=jnp.bfloat16)
    assert out2.shape == (B, layer_channels[-1], L2)
    assert jnp.allclose(out2.astype(jnp.float32), ref2,
                        atol=2e-2, rtol=2e-2), "ragged/batched mismatch"

    print("KERNEL_OK")
</pallas_src>

<mosaic_0001>
module attributes {stable_mosaic.version = 11 : i64} {
  func.func @kernel(%arg0: i32, %arg1: i32, %arg2: memref<1x4x32xf32, #tpu.memory_space<vmem>>, %arg3: memref<32x4xf32, #tpu.memory_space<vmem>>, %arg4: memref<32x1xf32, #tpu.memory_space<vmem>>, %arg5: memref<16x32xf32, #tpu.memory_space<vmem>>, %arg6: memref<16x1xf32, #tpu.memory_space<vmem>>, %arg7: memref<1x16x32xf32, #tpu.memory_space<vmem>>) attributes {dimension_semantics = [#tpu.dimension_semantics<parallel>, #tpu.dimension_semantics<parallel>], iteration_bounds = array<i64: 1, 1>, scalar_prefetch = 0 : i64, scratch_operands = 0 : i64, tpu.core_type = #tpu.core_type<tc>, window_params = [{transform_indices = @transform_0, window_bounds = array<i64: 1, 4, 32>}, {pipeline_mode = #tpu.pipeline_mode<synchronous>, transform_indices = @transform_1, window_bounds = array<i64: 32, 4>}, {pipeline_mode = #tpu.pipeline_mode<synchronous>, transform_indices = @transform_2, window_bounds = array<i64: 32, 1>}, {pipeline_mode = #tpu.pipeline_mode<synchronous>, transform_indices = @transform_3, window_bounds = array<i64: 16, 32>}, {pipeline_mode = #tpu.pipeline_mode<synchronous>, transform_indices = @transform_4, window_bounds = array<i64: 16, 1>}, {transform_indices = @transform_5, window_bounds = array<i64: 1, 16, 32>}]} {
    %c0 = arith.constant 0 : index
    %c0_0 = arith.constant 0 : index
    %0 = vector.load %arg3[%c0, %c0_0] : memref<32x4xf32, #tpu.memory_space<vmem>>, vector<32x4xf32>
    %c0_1 = arith.constant 0 : index
    %c0_2 = arith.constant 0 : index
    %1 = vector.load %arg5[%c0_1, %c0_2] : memref<16x32xf32, #tpu.memory_space<vmem>>, vector<16x32xf32>
    %c0_3 = arith.constant 0 : index
    %c0_4 = arith.constant 0 : index
    %2 = vector.load %arg4[%c0_3, %c0_4] : memref<32x1xf32, #tpu.memory_space<vmem>>, vector<32x1xf32>
    %c0_5 = arith.constant 0 : index
    %c0_6 = arith.constant 0 : index
    %3 = vector.load %arg6[%c0_5, %c0_6] : memref<16x1xf32, #tpu.memory_space<vmem>>, vector<16x1xf32>
    %c0_7 = arith.constant 0 : index
    %c0_8 = arith.constant 0 : index
    %c0_9 = arith.constant 0 : index
    %4 = vector.load %arg2[%c0_7, %c0_8, %c0_9] : memref<1x4x32xf32, #tpu.memory_space<vmem>>, vector<1x4x32xf32>
    %5 = vector.shape_cast %4 : vector<1x4x32xf32> to vector<4x32xf32>
    %cst = arith.constant dense<0.000000e+00> : vector<32x32xf32>
    %6 = tpu.matmul %0, %5, %cst {dimension_numbers = #tpu.dot_dimension_numbers<[1], [0], [0], [1], [0, 0, 1, 1], [], []>} : vector<32x4xf32>, vector<4x32xf32>, vector<32x32xf32> -> vector<32x32xf32>
    %7 = vector.broadcast %2 : vector<32x1xf32> to vector<32x32xf32>
    %8 = arith.addf %6, %7 : vector<32x32xf32>
    %cst_10 = arith.constant 0.000000e+00 : f32
    %9 = vector.broadcast %cst_10 : f32 to vector<32x32xf32>
    %10 = arith.maximumf %8, %9 : vector<32x32xf32>
    %cst_11 = arith.constant dense<0.000000e+00> : vector<16x32xf32>
    %11 = tpu.matmul %1, %10, %cst_11 {dimension_numbers = #tpu.dot_dimension_numbers<[1], [0], [0], [1], [0, 0, 1, 1], [], []>} : vector<16x32xf32>, vector<32x32xf32>, vector<16x32xf32> -> vector<16x32xf32>
    %12 = vector.broadcast %3 : vector<16x1xf32> to vector<16x32xf32>
    %13 = arith.addf %11, %12 : vector<16x32xf32>
    %cst_12 = arith.constant 0.000000e+00 : f32
    %14 = vector.broadcast %cst_12 : f32 to vector<16x32xf32>
    %15 = arith.maximumf %13, %14 : vector<16x32xf32>
    %c0_13 = arith.constant 0 : index
    %c0_14 = arith.constant 0 : index
    %c0_15 = arith.constant 0 : index
    %16 = vector.load %arg7[%c0_13, %c0_14, %c0_15] : memref<1x16x32xf32, #tpu.memory_space<vmem>>, vector<1x16x32xf32>
    %17 = vector.shape_cast %16 : vector<1x16x32xf32> to vector<16x32xf32>
    %18 = vector.shape_cast %15 : vector<16x32xf32> to vector<1x16x32xf32>
    tpu.vector_store %arg7[%c0_13, %c0_14, %c0_15], %18 {strides = array<i32>} : memref<1x16x32xf32, #tpu.memory_space<vmem>>, vector<1x16x32xf32>,
    return
  }
  func.func @transform_0(%arg0: i32, %arg1: i32) -> (i32, i32, i32) {
    %c0_i32 = arith.constant 0 : i32
    %c0_i32_0 = arith.constant 0 : i32
    return %arg0, %c0_i32, %arg1 : i32, i32, i32
  }
  func.func @transform_1(%arg0: i32, %arg1: i32) -> (i32, i32) {
    %c0_i32 = arith.constant 0 : i32
    %c0_i32_0 = arith.constant 0 : i32
    %c0_i32_1 = arith.constant 0 : i32
    return %c0_i32, %c0_i32_0 : i32, i32
  }
  func.func @transform_2(%arg0: i32, %arg1: i32) -> (i32, i32) {
    %c0_i32 = arith.constant 0 : i32
    %c0_i32_0 = arith.constant 0 : i32
    %c0_i32_1 = arith.constant 0 : i32
    return %c0_i32, %c0_i32_0 : i32, i32
  }
  func.func @transform_3(%arg0: i32, %arg1: i32) -> (i32, i32) {
    %c0_i32 = arith.constant 0 : i32
    %c0_i32_0 = arith.constant 0 : i32
    %c0_i32_1 = arith.constant 0 : i32
    return %c0_i32, %c0_i32_0 : i32, i32
  }
  func.func @transform_4(%arg0: i32, %arg1: i32) -> (i32, i32) {
    %c0_i32 = arith.constant 0 : i32
    %c0_i32_0 = arith.constant 0 : i32
    %c0_i32_1 = arith.constant 0 : i32
    return %c0_i32, %c0_i32_0 : i32, i32
  }
  func.func @transform_5(%arg0: i32, %arg1: i32) -> (i32, i32, i32) {
    %c0_i32 = arith.constant 0 : i32
    %c0_i32_0 = arith.constant 0 : i32
    return %arg0, %c0_i32, %arg1 : i32, i32, i32
  }
}

</mosaic_0001>

<bundles_post_ra>
// kernel: tpu_custom_call.1
= control target key start
LH: loop header
LB: loop body
LE: loop exit
PB: predicated region body
PF: predicated region fallthrough
CT: control target
= control target key end

     0   :  { %vm67_vm0 = vcmask 1043456   ;;  %vm54_vm1 = vcmask 31744   ;;  %v347_v5 = vmov 0   ;;  %s440_s0 = inlined_call_operand.vmem [shape: f32[1,4,32], index: 0, kind: input, shape index: {}]   ;;  %s441_s1 = inlined_call_operand.vmem [shape: f32[32,4], index: 1, kind: input, shape index: {}]   ;;  %s442_s2 = inlined_call_operand.vmem [shape: f32[32,1], index: 2, kind: input, shape index: {}]   ;;  %s443_s3 = inlined_call_operand.vmem [shape: f32[16,32], index: 3, kind: input, shape index: {}]   ;;  %s444_s4 = inlined_call_operand.vmem [shape: f32[16,1], index: 4, kind: input, shape index: {}]   ;;  %s445_s5 = inlined_call_operand.hbm [shape: f32[1,16,32], index: 5, kind: output, shape index: {}]  }
   0x1   :  { %v33_v0 = vld [vmem:[%s440_s0] sm:$0xf]  ;;  %v22_v2 = vld [vmem:[%s441_s1 + $0x8] sm:$0xff]  ;;  %v23_v3 = vld [vmem:[%s441_s1 + $0x10] sm:$0xff]  ;;  %321 = vset.pattern.permute.xlu0 %v347_v5 }
   0x2   :  { %v21_v1 = vld [vmem:[%s441_s1] sm:$0xff]  ;;  %290 = vmatprep.subr.msk.mxu0 %vm67_vm0, %v33_v0  ;;  %v29_v6 = vld [vmem:[%s442_s2 + $0x10] sm:$0xff] }
   0x3   :  { %292 = vmatprep.mubr.msk.f32.mxu0 %vm54_vm1, %v21_v1  ;;  %v27_v4 = vld [vmem:[%s442_s2] sm:$0xff]  ;;  %291 = vmatpush3.msk.msra.mxu0 %vm67_vm0, %v33_v0 }
   0x4   :  { %293 = vmatmul.mubr.msk.f32.vlgmr.msra.gmra.mrb[0].mxu0 %vm54_vm1, %v22_v2  ;;  %36 = vperm.xlu0 %321, %v27_v4  }
   0x5   :  { %10 = vsyncpa [#allocation3], 0  ;;  %295 = vmatprep.mubr.msk.f32.mxu0 %vm54_vm1, %v23_v3  ;;  %v24_v7 = vld [vmem:[%s441_s1 + $0x18] sm:$0xff]  ;;  %322 = vset.pattern.permute.xlu1 %v347_v5  ;;  %v28_v8 = vld [vmem:[%s442_s2 + $0x8] sm:$0xff]  ;;  %vm170_vm2 = vcmask 261120   ;;  %s348_s15 = smov [#allocation2]  }
   0x6   :  { %46 = vperm.xlu1 %322, %v29_v6   ;;  %v30_v9 = vld [vmem:[%s442_s2 + $0x18] sm:$0xff]  ;;  %v31_v10 = vld [vmem:[%s444_s4] sm:$0xff]  ;;  %v32_v11 = vld [vmem:[%s444_s4 + $0x8] sm:$0xff]  ;;  %s261_s16 = sshll.u32 %s348_s15, 4  ;;  %s262_s16 = int_to_ptr.vmem [resolvable:$true] %s261_s16 }
   0x7   :  { %v25_v12 = vld [vmem:[%s443_s3] sm:$0xff]  ;;  %v26_v31 = vld [vmem:[%s443_s3 + $0x8] sm:$0xff]  ;;  %s323_s17 = scalar_lea.vmem %s262_s16, 256  ;;  %p328_p1 = scmp.lt.s32.totalorder %s262_s16, %s262_s16 }
   0x8   :  { %296 = vmatmul.mubr.msk.f32.gmra.mrb[2].mxu0 %vm54_vm1, %v24_v7  ;;  %41 = vperm.xlu0 %321, %v28_v8   ;;  %p324_p0 = scmp.ne.s32.totalorder %s262_s16, %s323_s17  ;;  %p329_p2 = scmp.lt.s32.totalorder %s323_s17, %s323_s17 }
   0x9   :  { %306 = vmatprep.mubr.msk.f32.mxu1 %vm170_vm2, %v25_v12 }
   0xa   :  { %51 = vperm.xlu1 %322, %v30_v9   ;;  %p330_p3 = por %p329_p2, %p328_p1 }
   0xc   :  { %162 = vperm.xlu0 %321, %v31_v10   ;;  %p331_p4 = pnand %p330_p3, %p324_p0 }
   0xe   :  { %167 = vperm.xlu1 %322, %v32_v11  }
  0x83   :  { %v37_v13 = vpop.permute.xlu0 %36 }
  0x85   :  { %v47_v14 = vpop.permute.xlu1 %46 }
  0x87   :  { %v42_v15 = vpop.permute.xlu0 %41 }
  0x89   :  { %v52_v21 = vpop.permute.xlu1 %51 }
  0x8b   :  { %v163_v34 = vpop.permute.xlu0 %162 }
  0x8d   :  { %v168_v32 = vpop.permute.xlu1 %167 }
  0xd7   :  { %v294_v16 = vpop.f32.mrb[0].mxu0 }
  0xd8   :  { %v143_v17 = vadd.f32 %v294_v16, %v42_v15  ;;  %v137_v18 = vpop.f32.mrb[1].mxu0 }
  0xd9   :  { %v138_v19 = vadd.f32 %v137_v18, %v37_v13 }
  0xda   :  { %v157_v20 = vmax.f32 %v143_v17, 0.0 }
  0xdb   :  { %v156_v22 = vmax.f32 %v138_v19, 0.0  ;;  %v297_v23 = vpop.f32.mrb[2].mxu0 }
  0xdc   :  { %v153_v24 = vadd.f32 %v297_v23, %v52_v21  ;;  %v147_v25 = vpop.f32.mrb[3].mxu0 }
  0xdd   :  { %v148_v26 = vadd.f32 %v147_v25, %v47_v14  ;;  %v309_v27 = vpack.c.bf16 %v157_v20, %v156_v22 }
  0xde   :  { %v159_v28 = vmax.f32 %v153_v24, 0.0 }
  0xdf   :  { %v158_v29 = vmax.f32 %v148_v26, 0.0  ;;  %310 = vmatprep.subr.bf16.mxu1 %v309_v27 }
  0xe0   :  { %312 = vmatpush3.bf16.msra.mxu1 %v309_v27 }
  0xe1   :  { %v313_v30 = vpack.c.bf16 %v159_v28, %v158_v29 }
  0xe3   :  { %314 = vmatprep.subr.bf16.mxu1 %v313_v30 }
  0xe4   :  { %316 = vmatpush3.bf16.msra.mxu1 %v313_v30 }
  0xe7   :  { %307 = vmatmul.mubr.msk.f32.vlgmr.msra.gmra.mrb[0].mxu1 %vm170_vm2, %v26_v31 }
 0x1ba   :  { %v308_v33 = vpop.f32.mrb[0].mxu1 }
 0x1bb   :  { %v249_v35 = vadd.f32 %v308_v33, %v168_v32  ;;  %v243_v36 = vpop.f32.mrb[1].mxu1 }
 0x1bc   :  { %v244_v37 = vadd.f32 %v243_v36, %v163_v34 }
 0x1bd   :  { %v253_v38 = vmax.f32 %v249_v35, 0.0 }
 0x1be   :  { %v252_v39 = vmax.f32 %v244_v37, 0.0 }
 0x1bf   :  { %255 = vst.msk [vmem:[#allocation2 + $0x8] sm:$0xff] %vm170_vm2, %v253_v38 }
 0x1c0   :  { %254 = vst.msk [vmem:[#allocation2] sm:$0xff] %vm170_vm2, %v252_v39 }
 0x1c1   :  { %334 = shalt.err (!%p331_p4)
}
 0x1c2   :  { %s335_s19 = scalar_lea.hbm %s445_s5, 256 }
 0x1c3   :  { %p336_p5 = scmp.ne.s32.totalorder %s445_s5, %s335_s19  ;;  %p339_p6 = scmp.lt.u32.totalorder %s335_s19, %s445_s5 }
 0x1c5   :  { %p341_p7 = pnand %p339_p6, %p336_p5 }
 0x1c7   :  { %344 = shalt.err (!%p341_p7)
}
 0x1c8   :  { %s349_s24 = smov 128   ;;  %s350_s25 = smov 8  }
 0x1c9   :  { %267 = dma.vmem_to_hbm [thread:$0]  %s262_s16, 256, %s445_s5, [#allocation3], %s349_s24, %s349_s24, %s350_s25  }
 0x1ca   :  { %345 = dma.done.wait [#allocation3], 256  }
 0x1cb   :  { %346 = vsyncadd [#allocation3], 4294967040 }
 0x1cc   :  { %271 = vsyncpa [#allocation3], 1 }

</bundles_post_ra>
